<compile_context>
chip_gen: v7x
topology: tpu7x:2x2x1
jax: 0.10.0
libtpu: 0.0.40
codegen_flags: <defaults>
</compile_context>

<pallas_src>
import jax
import jax.numpy as jnp
from jax.experimental import pallas as pl
from jax.experimental.pallas import tpu as pltpu

LANES = 128
MAX_TM = 8192          # rows per grid block: 8192*128*4B = 4 MiB f32 per logits block
STRIP = 512            # rows per in-kernel strip (bounds live VMEM intermediates)
SUBLANE_ALIGN = 32     # row alignment that satisfies f32(8)/bf16(16)/int8(32) tiles


def _round_up(x: int, m: int) -> int:
    return ((x + m - 1) // m) * m


def _make_bce_kernel(*, tm: int, strip: int, full_rows: int, rem: int, needs_mask: bool):
    n_strips = tm // strip

    def kernel(x_ref, y_ref, out_ref):
        c = pl.program_id(0)           # chunk (parallel) axis
        j = pl.program_id(1)           # reduction axis within the chunk
        steps = pl.num_programs(1)

        @pl.when(j == 0)
        def _():
            out_ref[...] = jnp.zeros_like(out_ref)

        bi = c * steps + j             # flat block index over the logical row space

        if needs_mask:
            # Hoisted broadcasts (JAX does not CSE broadcast_in_dim in loops).
            sub_iota = jax.lax.broadcasted_iota(jnp.int32, (strip, LANES), 0)
            lane_iota = jax.lax.broadcasted_iota(jnp.int32, (strip, LANES), 1)

        @pl.loop(0, n_strips)
        def _(s):
            r0 = pl.multiple_of(s * strip, strip)
            x = x_ref[pl.ds(r0, strip), :].astype(jnp.float32)
            y = y_ref[pl.ds(r0, strip), :].astype(jnp.float32)

            # One exp + one log per element (EUP-friendly).
            t = jnp.log1p(jnp.exp(-jnp.abs(x)))
            sp_pos = jnp.maximum(x, 0.0) + t        # -log(1 - sigmoid(x))
            sp_neg = sp_pos - x                     # -log(sigmoid(x))
            # torch.binary_cross_entropy clamps each log term at -100:
            loss = (y * jnp.minimum(sp_neg, 100.0)
                    + (1.0 - y) * jnp.minimum(sp_pos, 100.0))

            if needs_mask:
                row = bi * tm + r0 + sub_iota       # global row index
                valid = row < full_rows
                if rem:
                    valid = valid | ((row == full_rows) & (lane_iota < rem))
                loss = jnp.where(valid, loss, 0.0)

            # (strip,128) -> (strip//8, 8, 128), sum leading axis: pure vreg adds
            # on the VPU; accumulate into the resident (8,128) output block.
            out_ref[...] += jnp.sum(loss.reshape(-1, 8, LANES), axis=0)

    return kernel


def ce_loss(logits: jax.Array, labels: jax.Array) -> jax.Array:
    """Mean BCE(sigmoid(logits), labels.float()) — equivalent to CELoss.forward."""
    assert logits.shape == labels.shape
    total = logits.size

    x = logits.reshape(-1)
    y = labels.reshape(-1)

    full_rows, rem = divmod(total, LANES)
    M = full_rows + (1 if rem else 0)            # logical rows (last may be partial)

    if rem:
        # Only a sub-128 ragged tail needs a physical pad (pad value irrelevant:
        # the in-kernel element mask zeroes it). The lane-aligned common case is
        # a zero-copy reshape.
        pad = LANES - rem
        x = jnp.pad(x, (0, pad))
        y = jnp.pad(y, (0, pad))

    x2 = x.reshape(M, LANES)                     # no dtype cast (kernel casts)
    y2 = y.reshape(M, LANES)                     # labels stay in their narrow dtype

    # --- tile geometry --------------------------------------------------------
    strip = min(STRIP, _round_up(M, SUBLANE_ALIGN))
    tm = min(MAX_TM, _round_up(M, strip))        # tm is always a multiple of strip
    num_blocks = pl.cdiv(M, tm)

    # Leading "parallel" axis: 2 independent chunks when possible -> both v7x
    # TensorCores get work (no-op on single-TC v5e/v6e).
    NC = 2 if num_blocks >= 2 else 1
    steps = pl.cdiv(num_blocks, NC)

    # Any overhang (ragged lanes, ragged rows, block rounding, or the duplicate
    # step from an odd block count) is zeroed by the in-kernel mask.
    needs_mask = (NC * steps * tm * LANES != total)

    if NC * steps == num_blocks:
        idx = lambda c, j: (c * steps + j, 0)
    else:
        # Extra (c, j) step re-reads the last real block (valid DMA); its
        # contribution is fully masked to zero inside the kernel.
        idx = lambda c, j: (jnp.minimum(c * steps + j, num_blocks - 1), 0)

    kernel = _make_bce_kernel(tm=tm, strip=strip, full_rows=full_rows,
                              rem=rem, needs_mask=needs_mask)

    cost = pl.CostEstimate(
        flops=12 * total,
        transcendentals=2 * total,
        bytes_accessed=total * (logits.dtype.itemsize + labels.dtype.itemsize)
                       + NC * 8 * LANES * 4,
    )

    partials = pl.pallas_call(
        kernel,
        out_shape=jax.ShapeDtypeStruct((NC * 8, LANES), jnp.float32),
        grid_spec=pltpu.PrefetchScalarGridSpec(
            num_scalar_prefetch=0,
            grid=(NC, steps),
            in_specs=[
                pl.BlockSpec((tm, LANES), idx),
                pl.BlockSpec((tm, LANES), idx),
            ],
            out_specs=pl.BlockSpec((8, LANES), lambda c, j: (c, 0)),
        ),
        compiler_params=pltpu.CompilerParams(
            dimension_semantics=("parallel", "arbitrary"),
            vmem_limit_bytes=32 * 1024 * 1024,
        ),
        cost_estimate=cost,
    )(x2, y2)

    # Single tiny cross-lane reduce + mean, outside the kernel.
    return jnp.sum(partials) / jnp.float32(total)


if __name__ == "__main__":
    key = jax.random.PRNGKey(0)
    k1, k2 = jax.random.split(key)

    # Segmentation-style logits tensor (NCHW), small shapes.
    logits = jax.random.normal(k1, (2, 4, 16, 16), dtype=jnp.float32)
    labels = jax.random.bernoulli(k2, p=0.5, shape=(2, 4, 16, 16)).astype(jnp.int8)

    loss = ce_loss(logits, labels)
    jax.block_until_ready(loss)

    # Pure-JAX reference mirroring torch.nn.functional.binary_cross_entropy.
    p = jax.nn.sigmoid(logits)
    yf = labels.astype(jnp.float32)
    ref = jnp.mean(-(yf * jnp.maximum(jnp.log(p), -100.0)
                     + (1.0 - yf) * jnp.maximum(jnp.log(1.0 - p), -100.0)))
    assert jnp.allclose(loss, ref, rtol=1e-5, atol=1e-5), (loss, ref)

    print("KERNEL_OK")
</pallas_src>

<mosaic_0001>
module attributes {stable_mosaic.version = 11 : i64} {
  func.func @kernel(%arg0: i32, %arg1: i32, %arg2: memref<32x128xf32, #tpu.memory_space<vmem>>, %arg3: memref<32x128xi8, #tpu.memory_space<vmem>>, %arg4: memref<8x128xf32, #tpu.memory_space<vmem>>) attributes {dimension_semantics = [#tpu.dimension_semantics<parallel>, #tpu.dimension_semantics<arbitrary>], iteration_bounds = array<i64: 1, 1>, scalar_prefetch = 0 : i64, scratch_operands = 0 : i64, tpu.core_type = #tpu.core_type<tc>, window_params = [{transform_indices = @transform_0, window_bounds = array<i64: 32, 128>}, {transform_indices = @transform_1, window_bounds = array<i64: 32, 128>}, {transform_indices = @transform_2, window_bounds = array<i64: 8, 128>}]} {
    %c0_i32 = arith.constant 0 : i32
    %0 = arith.cmpi eq, %arg1, %c0_i32 : i32
    %1 = arith.extui %0 : i1 to i32
    %c0_i32_0 = arith.constant 0 : i32
    %2 = arith.cmpi ne, %1, %c0_i32_0 : i32
    scf.if %2 {
      %cst_17 = arith.constant 0.000000e+00 : f32
      %46 = vector.broadcast %cst_17 : f32 to vector<8x128xf32>
      %c0_18 = arith.constant 0 : index
      %c0_19 = arith.constant 0 : index
      %47 = vector.load %arg4[%c0_18, %c0_19] : memref<8x128xf32, #tpu.memory_space<vmem>>, vector<8x128xf32>
      tpu.vector_store %arg4[%c0_18, %c0_19], %46 {strides = array<i32>} : memref<8x128xf32, #tpu.memory_space<vmem>>, vector<8x128xf32>,
    } else {
    }
    %c1_i32 = arith.constant 1 : i32
    %3 = arith.muli %arg0, %c1_i32 : i32
    %4 = arith.addi %3, %arg1 : i32
    %5 = tpu.iota {dimensions = array<i32: 0>} : vector<32x128xi32>
    %c0_i32_1 = arith.constant 0 : i32
    %c1_i32_2 = arith.constant 1 : i32
    %6 = arith.muli %c0_i32_1, %c1_i32_2 : i32
    %c0_i32_3 = arith.constant 0 : i32
    %7 = arith.addi %c0_i32_3, %6 : i32
    %c32_i32 = arith.constant 32 : i32
    %8 = arith.muli %7, %c32_i32 : i32
    %9 = tpu.assume_multiple %8, 32 : i32
    %10 = arith.index_cast %9 : i32 to index
    %c0 = arith.constant 0 : index
    %11 = vector.load %arg2[%10, %c0] : memref<32x128xf32, #tpu.memory_space<vmem>>, vector<32x128xf32>
    %12 = arith.index_cast %9 : i32 to index
    %c0_4 = arith.constant 0 : index
    %13 = vector.load %arg3[%12, %c0_4] : memref<32x128xi8, #tpu.memory_space<vmem>>, vector<32x128xi8>
    %14 = arith.sitofp %13 : vector<32x128xi8> to vector<32x128xf32>
    %15 = math.absf %11 : vector<32x128xf32>
    %cst = arith.constant 0.000000e+00 : f32
    %16 = vector.broadcast %cst : f32 to vector<32x128xf32>
    %17 = arith.subf %16, %15 : vector<32x128xf32>
    %18 = math.exp %17 : vector<32x128xf32>
    %19 = math.log1p %18 : vector<32x128xf32>
    %cst_5 = arith.constant 0.000000e+00 : f32
    %20 = vector.broadcast %cst_5 : f32 to vector<32x128xf32>
    %21 = arith.maximumf %11, %20 : vector<32x128xf32>
    %22 = arith.addf %21, %19 : vector<32x128xf32>
    %23 = arith.subf %22, %11 : vector<32x128xf32>
    %cst_6 = arith.constant 1.000000e+02 : f32
    %24 = vector.broadcast %cst_6 : f32 to vector<32x128xf32>
    %25 = arith.minimumf %23, %24 : vector<32x128xf32>
    %26 = arith.mulf %14, %25 : vector<32x128xf32>
    %cst_7 = arith.constant 1.000000e+00 : f32
    %27 = vector.broadcast %cst_7 : f32 to vector<32x128xf32>
    %28 = arith.subf %27, %14 : vector<32x128xf32>
    %cst_8 = arith.constant 1.000000e+02 : f32
    %29 = vector.broadcast %cst_8 : f32 to vector<32x128xf32>
    %30 = arith.minimumf %22, %29 : vector<32x128xf32>
    %31 = arith.mulf %28, %30 : vector<32x128xf32>
    %32 = arith.addf %26, %31 : vector<32x128xf32>
    %c32_i32_9 = arith.constant 32 : i32
    %33 = arith.muli %4, %c32_i32_9 : i32
    %34 = arith.addi %33, %9 : i32
    %35 = vector.broadcast %34 : i32 to vector<32x128xi32>
    %36 = arith.addi %35, %5 : vector<32x128xi32>
    %c16_i32 = arith.constant 16 : i32
    %37 = vector.broadcast %c16_i32 : i32 to vector<32x128xi32>
    %38 = arith.cmpi slt, %36, %37 : vector<32x128xi32>
    %cst_10 = arith.constant 0.000000e+00 : f32
    %39 = vector.broadcast %cst_10 : f32 to vector<32x128xf32>
    %40 = arith.select %38, %32, %39 : vector<32x128xi1>, vector<32x128xf32>
    %c0_11 = arith.constant 0 : index
    %c0_12 = arith.constant 0 : index
    %41 = vector.load %arg4[%c0_11, %c0_12] : memref<8x128xf32, #tpu.memory_space<vmem>>, vector<8x128xf32>
    %42 = vector.shape_cast %40 : vector<32x128xf32> to vector<4x8x128xf32>
    %cst_13 = arith.constant dense<0.000000e+00> : vector<8x128xf32>
    %43 = vector.multi_reduction <add>, %42, %cst_13 [0] : vector<4x8x128xf32> to vector<8x128xf32>
    %44 = arith.addf %41, %43 : vector<8x128xf32>
    %c0_14 = arith.constant 0 : index
    %c0_15 = arith.constant 0 : index
    %45 = vector.load %arg4[%c0_14, %c0_15] : memref<8x128xf32, #tpu.memory_space<vmem>>, vector<8x128xf32>
    tpu.vector_store %arg4[%c0_14, %c0_15], %44 {strides = array<i32>} : memref<8x128xf32, #tpu.memory_space<vmem>>, vector<8x128xf32>,
    %c1_i32_16 = arith.constant 1 : i32
    return
  }
  func.func @transform_0(%arg0: i32, %arg1: i32) -> (i32, i32) {
    %c1_i32 = arith.constant 1 : i32
    %0 = arith.muli %arg0, %c1_i32 : i32
    %1 = arith.addi %0, %arg1 : i32
    %c0_i32 = arith.constant 0 : i32
    %c0_i32_0 = arith.constant 0 : i32
    return %1, %c0_i32 : i32, i32
  }
  func.func @transform_1(%arg0: i32, %arg1: i32) -> (i32, i32) {
    %c1_i32 = arith.constant 1 : i32
    %0 = arith.muli %arg0, %c1_i32 : i32
    %1 = arith.addi %0, %arg1 : i32
    %c0_i32 = arith.constant 0 : i32
    %c0_i32_0 = arith.constant 0 : i32
    return %1, %c0_i32 : i32, i32
  }
  func.func @transform_2(%arg0: i32, %arg1: i32) -> (i32, i32) {
    %c0_i32 = arith.constant 0 : i32
    %c0_i32_0 = arith.constant 0 : i32
    return %arg0, %c0_i32 : i32, i32
  }
}

</mosaic_0001>

<bundles_post_ra>
// kernel: tpu_custom_call.1
= control target key start
LH: loop header
LB: loop body
LE: loop exit
PB: predicated region body
PF: predicated region fallthrough
CT: control target
= control target key end

     0   :  { %7 = vsyncpa [#allocation3], 0  ;;  %s366_s0 = inlined_call_operand.hbm [shape: f32[16,128], index: 0, kind: input, shape index: {}]   ;;  %s367_s1 = inlined_call_operand.hbm [shape: s8[16,128], index: 1, kind: input, shape index: {}]   ;;  %s368_s2 = inlined_call_operand.hbm [shape: f32[8,128], index: 2, kind: output, shape index: {}]  }
   0x1   :  { %8 = vsyncpa [#allocation6], 0 }
   0x2   :  { %9 = vsyncpa [#allocation4], 0 }
   0x3   :  { %18 = vsyncadd [#allocation3], 256  ;;  %s308_s9 = smov [#allocation2]   ;;  %s236_s13 = scalar_lea.hbm %s366_s0, 256 }
   0x4   :  { %s23_s10 = sshll.u32 %s308_s9, 4  ;;  %p237_p0 = scmp.ne.s32.totalorder %s366_s0, %s236_s13  ;;  %s24_s10 = int_to_ptr.vmem [resolvable:$true] %s23_s10 }
   0x5   :  { %p240_p1 = scmp.lt.u32.totalorder %s236_s13, %s366_s0 }
   0x7   :  { %p242_p2 = pnand %p240_p1, %p237_p0 }
   0x9   :  { %245 = shalt.err (!%p242_p2)
}
   0xa   :  { %s246_s18 = scalar_lea.vmem %s24_s10, 256  ;;  %s250_s19 = scalar_lea.vmem %s24_s10, 512 }
   0xb   :  { %p247_p3 = scmp.ne.s32.totalorder %s24_s10, %s246_s18  ;;  %p251_p4 = scmp.lt.s32.totalorder %s24_s10, %s24_s10 }
   0xc   :  { %p252_p5 = scmp.lt.s32.totalorder %s250_s19, %s246_s18 }
   0xe   :  { %p253_p6 = por %p252_p5, %p251_p4 }
  0x10   :  { %p254_p7 = pnand %p253_p6, %p247_p3 }
  0x12   :  { %257 = shalt.err (!%p254_p7)
}
  0x13   :  { %s309_s20 = smov 128   ;;  %s310_s21 = smov 8  }
  0x14   :  { %29 = dma.hbm_to_vmem [thread:$0]  %s366_s0, 256, %s24_s10, [#allocation3], %s309_s20, %s309_s20, %s310_s21  }
  0x15   :  { %38 = vsyncadd [#allocation6], 64  ;;  %s311_s24 = smov [#allocation5]   ;;  %s258_s28 = scalar_lea.hbm %s367_s1, 64 }
  0x16   :  { %s43_s25 = sshll.u32 %s311_s24, 4  ;;  %p259_p8 = scmp.ne.s32.totalorder %s367_s1, %s258_s28  ;;  %s44_s25 = int_to_ptr.vmem [resolvable:$true] %s43_s25 }
  0x17   :  { %p262_p9 = scmp.lt.u32.totalorder %s258_s28, %s367_s1 }
  0x19   :  { %p264_p10 = pnand %p262_p9, %p259_p8 }
  0x1b   :  { %267 = shalt.err (!%p264_p10)
}
  0x1c   :  { %s268_s5 = scalar_lea.vmem %s44_s25, 64  ;;  %s272_s0 = scalar_lea.vmem %s44_s25, 128 }
  0x1d   :  { %p269_p11 = scmp.ne.s32.totalorder %s44_s25, %s268_s5  ;;  %p273_p12 = scmp.lt.s32.totalorder %s44_s25, %s44_s25 }
  0x1e   :  { %p274_p13 = scmp.lt.s32.totalorder %s272_s0, %s268_s5 }
  0x20   :  { %p275_p0 = por %p274_p13, %p273_p12 }
  0x22   :  { %p276_p1 = pnand %p275_p0, %p269_p11 }
  0x24   :  { %279 = shalt.err (!%p276_p1)
}
  0x25   :  { %s312_s6 = smov 32   ;;  %s313_s7 = smov 2  }
  0x26   :  { %49 = dma.hbm_to_vmem [thread:$0]  %s367_s1, 64, %s44_s25, [#allocation6], %s312_s6, %s312_s6, %s313_s7  }
  0x27   :  { %302 = dma.done.wait [#allocation3], 512  }
  0x28   :  { %303 = vsyncadd [#allocation3], 4294966784 }
  0x29   :  { %304 = dma.done.wait [#allocation6], 128  }
  0x2a   :  { %305 = vsyncadd [#allocation6], 4294967168  ;;  %v75_v0 = vld [vmem:[#allocation2] sm:$0xff]  ;;  %v76_v1 = vld [vmem:[#allocation2 + $0x8] sm:$0xff]  ;;  %s314_s1 = smov [#allocation7]  }
  0x2b   :  { %v91_v2 = vand.u32 2147483647, %v75_v0  ;;  %v92_v3 = vand.u32 2147483647, %v76_v1  ;;  %v217_v14 = vld [vmem:[#allocation5] sm:$0xf]  }
  0x2c   :  { %v218_v16 = vunpack.c.0.s8 %v217_v14  ;;  %v219_v19 = vunpack.c.1.s8 %v217_v14  ;;  %v143_v25 = vmax.f32 %v75_v0, 0.0  ;;  %v144_v29 = vmax.f32 %v76_v1, 0.0  ;;  %s206_s10 = sshll.u32 %s314_s1, 4  ;;  %s207_s10 = int_to_ptr.vmem [resolvable:$true] %s206_s10 }
  0x2d   :  { %v95_v4 = vsub.f32 0.0, %v91_v2  ;;  %v96_v5 = vsub.f32 0.0, %v92_v3  ;;  %s280_s11 = scalar_lea.vmem %s207_s10, 128  ;;  %p285_p3 = scmp.lt.s32.totalorder %s207_s10, %s207_s10 }
  0x2e   :  { %v87_v23 = vcvt.s32.f32 %v218_v16  ;;  %v88_v27 = vcvt.s32.f32 %v219_v19  ;;  %p281_p2 = scmp.ne.s32.totalorder %s207_s10, %s280_s11  ;;  %p286_p4 = scmp.lt.s32.totalorder %s280_s11, %s280_s11 }
  0x2f   :  { %v99_v6 = vmul.f32 1.442695, %v95_v4  ;;  %v101_v7 = vmul.f32 1.442695, %v96_v5 }
  0x30   :  { %v163_v34 = vsub.f32 1.0, %v87_v23  ;;  %v164_v36 = vsub.f32 1.0, %v88_v27  ;;  %p287_p5 = por %p286_p4, %p285_p3 }
  0x31   :  { %228 = vpow2.f32 %v99_v6 }
  0x32   :  { %230 = vpow2.f32 %v101_v7  ;;  %p288_p6 = pnand %p287_p5, %p281_p2 }
  0x3b   :  { %v229_v8 = vpop.eup %228 }
  0x3c   :  { %v231_v9 = vpop.eup %230  ;;  %v107_v10 = vadd.f32 1.0, %v229_v8  ;;  %v110_v12 = vmul.f32 -0.5, %v229_v8  ;;  %v113_v17 = vand.u32 2147483647, %v229_v8 }
  0x3d   :  { %v116_v11 = vadd.f32 1.0, %v231_v9  ;;  %v119_v13 = vmul.f32 -0.5, %v231_v9  ;;  %v122_v20 = vand.u32 2147483647, %v231_v9 }
  0x3e   :  { %232 = vlog2.f32 %v107_v10  ;;  %v111_v15 = vadd.f32 1.0, %v110_v12  ;;  %vm114_vm0 = vcmp.lt.f32.partialorder %v113_v17, 0.0004427343 }
  0x3f   :  { %234 = vlog2.f32 %v116_v11  ;;  %v120_v18 = vadd.f32 1.0, %v119_v13  ;;  %vm123_vm1 = vcmp.lt.f32.partialorder %v122_v20, 0.0004427343 }
  0x40   :  { %v112_v21 = vmul.f32 %v229_v8, %v111_v15 }
  0x41   :  { %v121_v24 = vmul.f32 %v231_v9, %v120_v18 }
  0x48   :  { %v233_v22 = vpop.eup %232 }
  0x49   :  { %v235_v26 = vpop.eup %234  ;;  %v109_v28 = vmul.f32 0.6931472, %v233_v22 }
  0x4a   :  { %v118_v30 = vmul.f32 0.6931472, %v235_v26 }
  0x4b   :  { %v115_v31 = vsel %vm114_vm0, %v112_v21, %v109_v28 }
  0x4c   :  { %v124_v32 = vsel %vm123_vm1, %v121_v24, %v118_v30  ;;  %v147_v33 = vadd.f32 %v143_v25, %v115_v31 }
  0x4d   :  { %v148_v35 = vadd.f32 %v144_v29, %v124_v32 }
  0x4e   :  { %v151_v37 = vsub.f32 %v147_v33, %v75_v0  ;;  %v167_v38 = vmin.f32 %v147_v33, 100.0 }
  0x4f   :  { %v152_v39 = vsub.f32 %v148_v35, %v76_v1  ;;  %v168_v40 = vmin.f32 %v148_v35, 100.0 }
  0x50   :  { %v155_v41 = vmin.f32 %v151_v37, 100.0  ;;  %v171_v42 = vmul.f32 %v167_v38, %v163_v34 }
  0x51   :  { %v156_v43 = vmin.f32 %v152_v39, 100.0  ;;  %v172_v44 = vmul.f32 %v168_v40, %v164_v36 }
  0x52   :  { %v159_v45 = vmul.f32 %v155_v41, %v87_v23 }
  0x53   :  { %v160_v46 = vmul.f32 %v156_v43, %v88_v27 }
  0x54   :  { %v175_v47 = vadd.f32 %v171_v42, %v159_v45 }
  0x55   :  { %v176_v48 = vadd.f32 %v172_v44, %v160_v46 }
  0x57   :  { %v195_v49 = vadd.f32 %v176_v48, %v175_v47 }
  0x59   :  { %199 = vst [vmem:[#allocation7] sm:$0xff] %v195_v49 }
  0x5a   :  { %291 = shalt.err (!%p288_p6)
}
  0x5b   :  { %s292_s14 = scalar_lea.hbm %s368_s2, 128 }
  0x5c   :  { %p293_p7 = scmp.ne.s32.totalorder %s368_s2, %s292_s14  ;;  %p296_p8 = scmp.lt.u32.totalorder %s292_s14, %s368_s2 }
  0x5e   :  { %p298_p9 = pnand %p296_p8, %p293_p7 }
  0x60   :  { %301 = shalt.err (!%p298_p9)
}
  0x61   :  { %209 = dma.vmem_to_hbm [thread:$0]  %s207_s10, 128, %s368_s2, [#allocation4]  }
  0x62   :  { %306 = dma.done.wait [#allocation4], 128  }
  0x63   :  { %307 = vsyncadd [#allocation4], 4294967168 }
  0x64   :  { %213 = vsyncpa [#allocation3], 1 }
  0x65   :  { %214 = vsyncpa [#allocation6], 1 }
  0x66   :  { %215 = vsyncpa [#allocation4], 1 }

</bundles_post_ra>
